<compile_context>
chip_gen: v7x
topology: tpu7x:2x2x1
jax: 0.10.0
libtpu: 0.0.40
codegen_flags: <defaults>
</compile_context>

<pallas_src>
import functools

import numpy as np

import jax
import jax.numpy as jnp
from jax.experimental import pallas as pl
from jax.experimental.pallas import tpu as pltpu


def _round_up(x, m):
    return (x + m - 1) // m * m


def _plan(l_in, out_size, stride, ksize):
    """Static tiling plan. off = input back-reach (columns of left zero-pad)."""
    off = (ksize - 1) // stride
    single_tile_max = max(1024, 128 * stride)
    if out_size <= single_tile_max:
        # Latency-bound regime: one grid step over the output axis.
        tn = out_size
        step = 0                      # kernel reads the full (padded) x block
        band = off + l_in
        nt = 1
    else:
        # Tiled regime: tn multiple of 128*stride -> x slice start t*step is a
        # multiple of 128; band rounded to 128 (same MXU pass count).
        m = max(1, 512 // (128 * stride))
        tn = 128 * stride * m
        step = 128 * m                # == tn // stride
        nt = (out_size + tn - 1) // tn
        band = _round_up(off + step, 128)
    l_in_pad = max(off + l_in, (nt - 1) * step + band)
    return {
        "off": off, "tn": tn, "step": step, "band": band, "nt": nt,
        "l_in_pad": l_in_pad, "left": off, "right": l_in_pad - (off + l_in),
    }


def _weight_block(weight_1d, stride, ksize, off, band, tn, dtype):
    """Banded (band, tn) block W[i, j] = w[j + (off - i)*stride] (0 outside [0,K)).

    Tile-invariant by construction (tn is a multiple of stride and x is padded),
    so one block serves every output tile.
    """
    w = np.asarray(jax.device_get(weight_1d), np.float32)
    i = np.arange(band)[:, None]
    j = np.arange(tn)[None, :]
    tap = j + (off - i) * stride
    valid = (tap >= 0) & (tap < ksize)
    blk = np.where(valid, w[np.clip(tap, 0, ksize - 1)], np.float32(0.0))
    return jnp.asarray(blk, dtype)


def _upconv_kernel(x_ref, w_ref, b_ref, o_ref, *, step, band):
    # x_ref: (tb, L_in_pad) VMEM, resident across the output-tile axis.
    # w_ref: (band, tn) VMEM, resident across the whole grid (index_map (0,0)).
    # b_ref: (1,) SMEM bias.  o_ref: (tb, tn) VMEM output tile.
    if step == 0:
        x_band = x_ref[...]                                  # single-tile path
    else:
        i0 = pl.multiple_of(pl.program_id(1) * step, 128)    # lane-aligned slice
        x_band = x_ref[:, pl.ds(i0, band)]
    w_blk = w_ref[...]
    y = jnp.dot(x_band.astype(w_blk.dtype), w_blk,
                preferred_element_type=jnp.float32)
    o_ref[...] = (y + b_ref[0]).astype(o_ref.dtype)


@functools.partial(jax.jit,
                   static_argnames=("stride", "ksize", "out_size", "out_dtype"))
def upconv_forward(x2d, w_blk, bias, *, stride, ksize, out_size,
                   out_dtype=jnp.float32):
    """x2d: (N, L_in) f32, w_blk: (band, tn) precomputed, bias: (1,) f32."""
    n, l_in = x2d.shape
    assert out_size == (l_in - 1) * stride + ksize
    p = _plan(l_in, out_size, stride, ksize)
    tn, step, band, nt = p["tn"], p["step"], p["band"], p["nt"]
    l_in_pad, left, right = p["l_in_pad"], p["left"], p["right"]
    assert w_blk.shape == (band, tn)

    # Pack batch onto sublanes.
    n_pad = _round_up(max(n, 8), 8)
    x_pad = x2d.astype(jnp.float32)
    if (n_pad != n) or left or right:
        x_pad = jnp.pad(x_pad, ((0, n_pad - n), (left, right)))

    out_bytes = np.dtype(out_dtype).itemsize
    cmp_bytes = np.dtype(w_blk.dtype).itemsize

    # VMEM budget: double-buffered x block + double-buffered output tile.
    try:
        info = pltpu.get_tpu_info()
        vmem_cap = int(getattr(info, "vmem_capacity_bytes", 64 << 20))
    except Exception:  # be conservative if the query is unavailable
        vmem_cap = 64 << 20
    budget = min(24 << 20, vmem_cap // 3)
    per_row = 2 * l_in_pad * 4 + 2 * tn * out_bytes
    tb_cap = max(8, (budget // per_row) // 8 * 8)
    tb_hi = 512 if vmem_cap >= (100 << 20) else 256   # bigger tiles on v5e/v6e
    tb = min(n_pad, tb_hi, tb_cap)

    grid_b = pl.cdiv(n_pad, tb)
    needed = tb * per_row + 2 * band * tn * cmp_bytes + (1 << 20)
    vmem_limit = int(min(max(needed, 8 << 20), 32 << 20))

    # Shard megacore by batch when possible so both v7x cores keep their own
    # resident x block; otherwise let the compiler split the output-tile axis.
    dims = ("parallel", "arbitrary") if grid_b >= 2 else ("parallel", "parallel")

    kernel = functools.partial(_upconv_kernel, step=step, band=band)
    y = pl.pallas_call(
        kernel,
        out_shape=jax.ShapeDtypeStruct((n_pad, out_size), out_dtype),
        grid_spec=pltpu.PrefetchScalarGridSpec(
            num_scalar_prefetch=0,
            grid=(grid_b, nt),
            in_specs=[
                # x indexed only by the batch axis -> fetched once per batch tile,
                # resident across all output tiles.
                pl.BlockSpec((tb, l_in_pad), lambda b, t: (b, 0)),
                # Precomputed banded weight block, resident across the whole grid.
                pl.BlockSpec((band, tn), lambda b, t: (0, 0)),
                # Bias scalar in SMEM.
                pl.BlockSpec(memory_space=pltpu.MemorySpace.SMEM),
            ],
            out_specs=pl.BlockSpec((tb, tn), lambda b, t: (b, t)),
        ),
        compiler_params=pltpu.CompilerParams(
            dimension_semantics=dims,
            vmem_limit_bytes=vmem_limit,
        ),
    )(x_pad, w_blk, bias)
    return y[:n] if n_pad != n else y


class UpConvPallas:
    """Mirror of the PyTorch UpConv module (ConvTranspose1d(1, 1, K, stride=S))."""

    def __init__(self, input_size, output_size, key, *,
                 compute_dtype=jnp.bfloat16, out_dtype=jnp.float32):
        assert output_size >= input_size > 0, "UpConv requires output_size >= input_size"
        self.input_size = input_size
        self.output_size = output_size
        self.stride = output_size // input_size
        self.kernel_size = output_size - (input_size - 1) * self.stride
        self.compute_dtype = compute_dtype
        self.out_dtype = out_dtype
        kw, kb = jax.random.split(key)
        # PyTorch ConvTranspose1d init: U(-1/sqrt(fan_in), 1/sqrt(fan_in)),
        # fan_in = in_channels * kernel_size = kernel_size.
        bound = 1.0 / (self.kernel_size ** 0.5)
        self.weight = jax.random.uniform(
            kw, (1, 1, self.kernel_size), jnp.float32, minval=-bound, maxval=bound)
        self.bias = jax.random.uniform(
            kb, (1,), jnp.float32, minval=-bound, maxval=bound)
        # Cache the banded (band, tn) weight block once (perf opt #1): it only
        # depends on weight / stride / K / tile plan.
        p = _plan(input_size, output_size, self.stride, self.kernel_size)
        self._w_blk = _weight_block(self.weight[0, 0], self.stride,
                                    self.kernel_size, p["off"], p["band"],
                                    p["tn"], compute_dtype)

    def __call__(self, x):
        # x: (N, 1, L_in) -> (N, 1, L_out)
        n = x.shape[0]
        x2d = x.reshape(n, self.input_size)
        y = upconv_forward(x2d, self._w_blk, self.bias,
                           stride=self.stride, ksize=self.kernel_size,
                           out_size=self.output_size, out_dtype=self.out_dtype)
        return y.reshape(n, 1, self.output_size)


def _reference_upconv(x, weight, bias, stride):
    """float64 numpy reference of ConvTranspose1d(1, 1, K, stride)."""
    xn = np.asarray(jax.device_get(x), np.float64)
    wn = np.asarray(jax.device_get(weight), np.float64)[0, 0]
    bn = float(np.asarray(jax.device_get(bias))[0])
    n, _, l_in = xn.shape
    k = wn.shape[0]
    l_out = (l_in - 1) * stride + k
    i = np.arange(l_in)[:, None]
    j = np.arange(l_out)[None, :]
    tap = j - i * stride
    wfull = np.where((tap >= 0) & (tap < k), wn[np.clip(tap, 0, k - 1)], 0.0)
    y = xn.reshape(n, l_in) @ wfull + bn
    return y.reshape(n, 1, l_out)


if __name__ == "__main__":
    key = jax.random.PRNGKey(0)

    configs = [
        # (input_size, output_size, batch)
        (8, 16, 2),        # K == stride (pure upsample), single grid step
        (8, 20, 3),        # K > stride (overlapping taps), single grid step
        (96, 768, 16),     # single lane-dense output tile
        (512, 2048, 16),   # tiled path: 4 aligned output tiles, x resident
        (256, 1030, 4),    # tiled path with back-reach, x padding, partial tile
    ]
    bf16_checked = {0, 3}  # also exercise the bf16-MXU default on these configs

    for idx, (l_in, l_out, batch) in enumerate(configs):
        k_param, k_x = jax.random.split(jax.random.fold_in(key, idx))
        x = jax.random.normal(k_x, (batch, 1, l_in), jnp.float32)

        # Exact-f32 MXU path: tight check against the float64 reference.
        mod32 = UpConvPallas(l_in, l_out, k_param, compute_dtype=jnp.float32)
        y32 = jax.block_until_ready(mod32(x))
        y_ref = _reference_upconv(x, mod32.weight, mod32.bias, mod32.stride)
        assert y32.shape == (batch, 1, l_out)
        np.testing.assert_allclose(np.asarray(y32, np.float64), y_ref,
                                   atol=1e-4, rtol=1e-4,
                                   err_msg=f"f32 mismatch for {(l_in, l_out, batch)}")

        # Default bf16-MXU path (perf-preferred): looser tolerance.
        if idx in bf16_checked:
            modbf = UpConvPallas(l_in, l_out, k_param)   # compute_dtype=bf16
            ybf = jax.block_until_ready(modbf(x))
            assert ybf.shape == (batch, 1, l_out)
            np.testing.assert_allclose(np.asarray(ybf, np.float64), y_ref,
                                       atol=5e-2, rtol=5e-2,
                                       err_msg=f"bf16 mismatch for {(l_in, l_out, batch)}")

    print("KERNEL_OK")
</pallas_src>

<mosaic_0001>
module attributes {stable_mosaic.version = 11 : i64} {
  func.func @_upconv_kernel(%arg0: i32, %arg1: i32, %arg2: memref<8x8xf32, #tpu.memory_space<vmem>>, %arg3: memref<8x16xf32, #tpu.memory_space<vmem>>, %arg4: memref<1xf32, #tpu.memory_space<smem>>, %arg5: memref<8x16xf32, #tpu.memory_space<vmem>>) attributes {dimension_semantics = [#tpu.dimension_semantics<parallel>, #tpu.dimension_semantics<parallel>], iteration_bounds = array<i64: 1, 1>, scalar_prefetch = 0 : i64, scratch_operands = 0 : i64, tpu.core_type = #tpu.core_type<tc>, window_params = [{transform_indices = @transform_0, window_bounds = array<i64: 8, 8>}, {pipeline_mode = #tpu.pipeline_mode<synchronous>, transform_indices = @transform_1, window_bounds = array<i64: 8, 16>}, {transform_indices = @transform_2, window_bounds = array<i64: 1>}, {transform_indices = @transform_3, window_bounds = array<i64: 8, 16>}]} {
    %c0 = arith.constant 0 : index
    %c0_0 = arith.constant 0 : index
    %0 = vector.load %arg2[%c0, %c0_0] : memref<8x8xf32, #tpu.memory_space<vmem>>, vector<8x8xf32>
    %c0_1 = arith.constant 0 : index
    %c0_2 = arith.constant 0 : index
    %1 = vector.load %arg3[%c0_1, %c0_2] : memref<8x16xf32, #tpu.memory_space<vmem>>, vector<8x16xf32>
    %cst = arith.constant dense<0.000000e+00> : vector<8x16xf32>
    %2 = tpu.matmul %0, %1, %cst {dimension_numbers = #tpu.dot_dimension_numbers<[1], [0], [0], [1], [0, 0, 1, 1], [], []>} : vector<8x8xf32>, vector<8x16xf32>, vector<8x16xf32> -> vector<8x16xf32>
    %c0_3 = arith.constant 0 : index
    %3 = memref.load %arg4[%c0_3] : memref<1xf32, #tpu.memory_space<smem>>
    %4 = vector.broadcast %3 : f32 to vector<8x16xf32>
    %5 = arith.addf %2, %4 : vector<8x16xf32>
    %c0_4 = arith.constant 0 : index
    %c0_5 = arith.constant 0 : index
    %6 = vector.load %arg5[%c0_4, %c0_5] : memref<8x16xf32, #tpu.memory_space<vmem>>, vector<8x16xf32>
    tpu.vector_store %arg5[%c0_4, %c0_5], %5 {strides = array<i32>} : memref<8x16xf32, #tpu.memory_space<vmem>>, vector<8x16xf32>,
    return
  }
  func.func @transform_0(%arg0: i32, %arg1: i32) -> (i32, i32) {
    %c0_i32 = arith.constant 0 : i32
    %c0_i32_0 = arith.constant 0 : i32
    return %arg0, %c0_i32 : i32, i32
  }
  func.func @transform_1(%arg0: i32, %arg1: i32) -> (i32, i32) {
    %c0_i32 = arith.constant 0 : i32
    %c0_i32_0 = arith.constant 0 : i32
    %c0_i32_1 = arith.constant 0 : i32
    return %c0_i32, %c0_i32_0 : i32, i32
  }
  func.func @transform_2(%arg0: i32, %arg1: i32) -> i32 {
    %c0_i32 = arith.constant 0 : i32
    %c0_i32_0 = arith.constant 0 : i32
    return %c0_i32 : i32
  }
  func.func @transform_3(%arg0: i32, %arg1: i32) -> (i32, i32) {
    %c0_i32 = arith.constant 0 : i32
    return %arg0, %arg1 : i32, i32
  }
}

</mosaic_0001>

<bundles_post_ra>
// kernel: upconv_forward.1
= control target key start
LH: loop header
LB: loop body
LE: loop exit
PB: predicated region body
PF: predicated region fallthrough
CT: control target
= control target key end

     0   :  { %vm19_vm0 = vcmask 64512   ;;  %v109_v0 = vmov 0.0   ;;  %vm110_vm1 = vmmov 0   ;;  %vm93_vm2 = vcmask 130048   ;;  %s143_s1 = inlined_call_operand.vmem [shape: f32[8,16], index: 1, kind: input, shape index: {}]   ;;  %s144_s0 = inlined_call_operand.vmem [shape: f32[8,8], index: 0, kind: input, shape index: {}]   ;;  %s145_s2 = inlined_call_operand.<no memory space> [shape: f32[1], index: 2, kind: input, shape index: {}]   ;;  %s146_s3 = inlined_call_operand.vmem [shape: f32[8,16], index: 3, kind: output, shape index: {}]  }
   0x1   :  { %102 = vmatprep.subr.mxu0 %v109_v0  ;;  %v16_v1 = vld [vmem:[%s143_s1] sm:$0xff]  ;;  %104 = vmatprep.mubr.msk.f32.mxu0 %vm110_vm1, %v109_v0  ;;  %v18_v3 = vstv %s145_s2 }
   0x2   :  { %v15_v2 = vld [vmem:[%s144_s0] sm:$0xff]  ;;  %103 = vmatpush3.msra.mxu0 %v16_v1 }
   0x3   :  { %105 = vmatmul.mubr.msk.f32.vlgmr.msra.gmra.mrb[0].mxu0 %vm19_vm0, %v15_v2 }
  0xd6   :  { %v89_v4 = vpop.f32.mrb[0].mxu0 }
  0xd7   :  { %v90_v5 = vadd.f32 %v89_v4, %v18_v3  ;;  %v106_v6 = vpop.f32.mrb[1].mxu0 }
  0xd9   :  { %94 = vst.msk [vmem:[%s146_s3] sm:$0xff] %vm93_vm2, %v90_v5 }

</bundles_post_ra>
